<compile_context>
chip_gen: v6e
topology: v6e:2x2x1
jax: 0.10.0
libtpu: 0.0.40
codegen_flags: <defaults>
</compile_context>

<pallas_src>
import functools

import jax
import jax.numpy as jnp
from jax import lax
from jax.experimental import pallas as pl
from jax.experimental.pallas import tpu as pltpu


def _round_up(x, m):
    return ((x + m - 1) // m) * m


def _vmem_capacity_bytes():
    """Physical VMEM per TensorCore; falls back to 128 MiB (v5e/v6e) if unknown."""
    try:
        info = pltpu.get_tpu_info()
        for name in ("vmem_capacity_bytes", "vmem_size_bytes", "vmem_bytes"):
            cap = getattr(info, name, None)
            if cap:
                return int(cap)
    except Exception:
        pass
    return 128 << 20


def _choose_tile_n(n, c, itemsize, capacity):
    """Largest row tile (multiple of 8) within a generation-aware per-buffer cap."""
    small_vmem = capacity <= (64 << 20)          # v7x-class parts
    cap_bytes = (2 << 20) if small_vmem else (4 << 20)
    cap_rows = 512 if small_vmem else 1024
    per_row = max(1, c * itemsize)
    rows = cap_bytes // per_row
    rows = max(8, (rows // 8) * 8)
    rows = min(rows, cap_rows)
    rows = min(rows, _round_up(n, 8))            # never larger than the padded problem
    return max(8, int(rows))


def _vmem_limit_bytes(tile_n, c, in_itemsize, capacity):
    """Scoped VMEM request: ~4 f32 temps + streamed in/out/target buffers + 20%."""
    logits_bufs = 2 * tile_n * c * in_itemsize   # double-buffered input stream
    f32_work = 4 * tile_n * c * 4                # f32 copy, exp, mask/select, fused temp
    tgt_bufs = 2 * tile_n * 128 * 4              # (tile_n, 1) i32 block lane-pads to 128
    out_bufs = 2 * max(tile_n, 8) * 128 * 4      # worst-case lane-padded column output
    need = int((logits_bufs + f32_work + tgt_bufs + out_bufs) * 1.2) + (1 << 20)
    hi = (36 << 20) if capacity <= (64 << 20) else (48 << 20)
    return int(min(max(need, 32 << 20), hi))


def _row_focal(x, tgt, alpha, gamma):
    """x: (TN, C) f32 logits, tgt: (TN, 1) i32 -> (TN, 1) f32 focal loss per row."""
    m = jnp.max(x, axis=-1, keepdims=True)                       # (TN, 1)
    ex = jnp.exp(x - m)                                          # (TN, C)
    sumexp = jnp.sum(ex, axis=-1, keepdims=True)                 # (TN, 1)

    # Lane-mask gather of the target logit (no dynamic gather on TPU).
    col = lax.broadcasted_iota(jnp.int32, x.shape, 1)            # (TN, C)
    tgt_logit = jnp.sum(jnp.where(col == tgt, x, 0.0),
                        axis=-1, keepdims=True)                  # (TN, 1)

    ce = jnp.maximum((m + jnp.log(sumexp)) - tgt_logit, 0.0)     # clamp rounding
    pt = jnp.exp(-ce)                                            # <= 1 since ce >= 0
    t = 1.0 - pt                                                 # >= 0

    if float(gamma) == 2.0:
        w = t * t                                                # free VPU multiply
    elif float(gamma) == int(gamma) and gamma >= 0:
        w = lax.integer_pow(t, int(gamma))
    else:
        w = jnp.power(jnp.maximum(t, 0.0), gamma)                # t >= 0, no NaN
    return alpha * w * ce


def _focal_rows_kernel(logits_ref, tgt_ref, out_ref, *, alpha, gamma, lane_dense):
    x = logits_ref[...].astype(jnp.float32)                      # (tile_n, C)
    focal = _row_focal(x, tgt_ref[...], alpha, gamma)            # (tile_n, 1)
    if lane_dense:
        out_ref[...] = jnp.transpose(focal, (1, 0))              # (1, tile_n) unmasked vst
    else:
        out_ref[...] = focal                                     # (tile_n, 1) column


def _focal_sum_kernel(logits_ref, tgt_ref, out_ref, acc_ref, *,
                      alpha, gamma, tile_n, steps, n_valid, need_mask):
    s = pl.program_id(0)       # partial-sum slice (parallel / core-parallel axis)
    i = pl.program_id(1)       # row-tile step within the slice (arbitrary axis)

    @pl.when(i == 0)
    def _():
        acc_ref[...] = jnp.zeros_like(acc_ref)

    x = logits_ref[...].astype(jnp.float32)                      # (tile_n, C)
    focal = _row_focal(x, tgt_ref[...], alpha, gamma)            # (tile_n, 1)

    if need_mask:                                                # zero padded rows
        row0 = (s * steps + i) * tile_n
        rows = row0 + lax.broadcasted_iota(jnp.int32, focal.shape, 0)
        focal = jnp.where(rows < n_valid, focal, 0.0)

    # Elementwise accumulate; cross-sublane reduce only once at the end.
    acc_ref[...] += focal

    @pl.when(i == steps - 1)
    def _():
        part = jnp.sum(acc_ref[...], axis=0, keepdims=True)      # (1, 1)
        out_ref[...] = jnp.broadcast_to(part, out_ref.shape)     # lane-dense (1, 128)


def focal_loss(logits, targets, *, alpha=1.0, gamma=2.0, reduction="mean",
               tile_n=None, num_partials=None, use_core_parallel=None):
    """Focal loss. logits: [N, C] float; targets: [N] int class indices in [0, C)."""
    assert reduction in ("mean", "sum", "none")
    N, C = logits.shape
    in_itemsize = jnp.dtype(logits.dtype).itemsize
    capacity = _vmem_capacity_bytes()
    if tile_n is None:
        tile_n = _choose_tile_n(N, C, in_itemsize, capacity)
    assert tile_n % 8 == 0 and tile_n > 0
    alpha = float(alpha)
    gamma = float(gamma)
    targets_i32 = targets.astype(jnp.int32)

    # ---------------- reduction='none': per-row output ----------------
    if reduction == "none":
        def run_none(t_rows, lane_dense):
            n_pad = _round_up(N, t_rows)
            pad = n_pad - N
            lg = jnp.pad(logits, ((0, pad), (0, 0))) if pad else logits
            tg = (jnp.pad(targets_i32, (0, pad)) if pad else targets_i32).reshape(n_pad, 1)
            kernel = functools.partial(_focal_rows_kernel, alpha=alpha,
                                       gamma=gamma, lane_dense=lane_dense)
            if lane_dense:
                out_shape = jax.ShapeDtypeStruct((1, n_pad), jnp.float32)
                out_spec = pl.BlockSpec((1, t_rows), lambda i: (0, i))
            else:
                out_shape = jax.ShapeDtypeStruct((n_pad, 1), jnp.float32)
                out_spec = pl.BlockSpec((t_rows, 1), lambda i: (i, 0))
            out = pl.pallas_call(
                kernel,
                out_shape=out_shape,
                grid_spec=pltpu.PrefetchScalarGridSpec(
                    num_scalar_prefetch=0,
                    grid=(n_pad // t_rows,),
                    in_specs=[
                        pl.BlockSpec((t_rows, C), lambda i: (i, 0)),
                        pl.BlockSpec((t_rows, 1), lambda i: (i, 0)),   # streamed targets
                    ],
                    out_specs=out_spec,
                ),
                compiler_params=pltpu.CompilerParams(
                    dimension_semantics=(pltpu.PARALLEL,),
                    vmem_limit_bytes=_vmem_limit_bytes(t_rows, C, in_itemsize, capacity),
                ),
            )(lg, tg)
            out = jax.block_until_ready(out)
            return out[0, :N] if lane_dense else out[:N, 0]

        n_pad8 = _round_up(N, 8)
        if tile_n >= n_pad8:
            t_dense = n_pad8                            # single block covers all rows
        else:
            t_dense = max(128, (tile_n // 128) * 128)   # lane-dense blocks need %128
        can_dense = (tile_n >= 128) or (tile_n >= n_pad8)
        if can_dense:
            try:
                return run_none(t_dense, lane_dense=True)
            except Exception:
                # TODO(synk): drop fallback once (TN,1)->(1,TN) relayout is guaranteed.
                pass
        return run_none(tile_n, lane_dense=False)

    # ---------------- reduction='mean'/'sum': partial sums ----------------
    n_tiles = pl.cdiv(N, tile_n)
    two_core_likely = capacity <= (64 << 20)   # v7x-class: 2 TCs/chip, 64 MiB VMEM/TC
    if num_partials is None:
        num_partials = 2 if (two_core_likely and n_tiles >= 4) else 1
    num_partials = max(1, int(num_partials))
    if use_core_parallel is None:
        use_core_parallel = two_core_likely and num_partials > 1

    n_pad = _round_up(N, tile_n * num_partials)
    steps = n_pad // (tile_n * num_partials)
    pad = n_pad - N
    need_mask = pad > 0

    logits_p = jnp.pad(logits, ((0, pad), (0, 0))) if pad else logits
    targets2d = (jnp.pad(targets_i32, (0, pad)) if pad else targets_i32).reshape(n_pad, 1)

    kernel = functools.partial(
        _focal_sum_kernel, alpha=alpha, gamma=gamma, tile_n=tile_n,
        steps=steps, n_valid=N, need_mask=need_mask)
    vmem_limit = _vmem_limit_bytes(tile_n, C, in_itemsize, capacity)

    def run_sum(first_axis_sem):
        return pl.pallas_call(
            kernel,
            # Per-slice partial sums live in lane-dense (1, 128) blocks so stores
            # are unmasked and the output BlockSpec satisfies TPU tiling.
            out_shape=jax.ShapeDtypeStruct((1, 128 * num_partials), jnp.float32),
            grid_spec=pltpu.PrefetchScalarGridSpec(
                num_scalar_prefetch=0,
                grid=(num_partials, steps),
                in_specs=[
                    pl.BlockSpec((tile_n, C), lambda s, i: (s * steps + i, 0)),
                    pl.BlockSpec((tile_n, 1), lambda s, i: (s * steps + i, 0)),
                ],
                out_specs=pl.BlockSpec((1, 128), lambda s, i: (0, s)),
                scratch_shapes=[pltpu.VMEM((tile_n, 1), jnp.float32)],
            ),
            compiler_params=pltpu.CompilerParams(
                dimension_semantics=(first_axis_sem, pltpu.ARBITRARY),
                vmem_limit_bytes=vmem_limit,
            ),
        )(logits_p, targets2d)

    if use_core_parallel:
        try:
            # Real cross-TensorCore sharding of the partial-sum axis on 2-TC parts.
            out = jax.block_until_ready(run_sum(pltpu.CORE_PARALLEL))
        except Exception:
            out = run_sum(pltpu.PARALLEL)
    else:
        out = run_sum(pltpu.PARALLEL)

    partials = out.reshape(num_partials, 128)[:, 0]
    total = jnp.sum(partials)
    if reduction == "mean":
        return total / N
    return total


def _focal_loss_ref(logits, targets, alpha=1.0, gamma=2.0, reduction="mean"):
    logp = jax.nn.log_softmax(logits.astype(jnp.float32), axis=-1)
    ce = -jnp.take_along_axis(logp, targets[:, None].astype(jnp.int32), axis=-1)[:, 0]
    pt = jnp.exp(-ce)
    fl = alpha * (1.0 - pt) ** gamma * ce
    if reduction == "mean":
        return jnp.mean(fl)
    if reduction == "sum":
        return jnp.sum(fl)
    return fl


if __name__ == "__main__":
    key = jax.random.PRNGKey(0)
    k1, k2, k3, k4, k5, k6 = jax.random.split(key, 6)

    # Case 1: small aligned batch, mean reduction (module default).
    N, C = 16, 32
    logits = jax.random.normal(k1, (N, C), dtype=jnp.float32)
    targets = jax.random.randint(k2, (N,), 0, C, dtype=jnp.int32)
    loss = jax.block_until_ready(focal_loss(logits, targets, reduction="mean"))
    ref = _focal_loss_ref(logits, targets, reduction="mean")
    assert jnp.allclose(loss, ref, rtol=1e-5, atol=1e-5), (loss, ref)

    # Case 2: N not a multiple of 8 -> padding + row masking, sum reduction.
    N2 = 13
    logits2 = jax.random.normal(k3, (N2, C), dtype=jnp.float32)
    targets2 = jax.random.randint(k4, (N2,), 0, C, dtype=jnp.int32)
    loss2 = jax.block_until_ready(focal_loss(logits2, targets2, reduction="sum"))
    ref2 = _focal_loss_ref(logits2, targets2, reduction="sum")
    assert jnp.allclose(loss2, ref2, rtol=1e-5, atol=1e-5), (loss2, ref2)

    # Case 3: per-element ('none') reduction, single lane-dense block.
    loss3 = jax.block_until_ready(focal_loss(logits, targets, reduction="none"))
    ref3 = _focal_loss_ref(logits, targets, reduction="none")
    assert jnp.allclose(loss3, ref3, rtol=1e-5, atol=1e-5)

    # Case 4: force the 2-partial (dual-TensorCore style) path at small scale.
    N4 = 32
    logits4 = jax.random.normal(k1, (N4, C), dtype=jnp.float32)
    targets4 = jax.random.randint(k2, (N4,), 0, C, dtype=jnp.int32)
    loss4 = jax.block_until_ready(
        focal_loss(logits4, targets4, reduction="mean", tile_n=8, num_partials=2))
    ref4 = _focal_loss_ref(logits4, targets4, reduction="mean")
    assert jnp.allclose(loss4, ref4, rtol=1e-5, atol=1e-5), (loss4, ref4)

    # Case 5: multi-tile 'none' (lane-dense 128-row blocks) + mean with padding.
    N5 = 200
    logits5 = jax.random.normal(k5, (N5, C), dtype=jnp.float32)
    targets5 = jax.random.randint(k6, (N5,), 0, C, dtype=jnp.int32)
    loss5 = jax.block_until_ready(
        focal_loss(logits5, targets5, reduction="none", tile_n=128))
    ref5 = _focal_loss_ref(logits5, targets5, reduction="none")
    assert jnp.allclose(loss5, ref5, rtol=1e-5, atol=1e-5)
    loss5m = jax.block_until_ready(
        focal_loss(logits5, targets5, reduction="mean", tile_n=128))
    ref5m = _focal_loss_ref(logits5, targets5, reduction="mean")
    assert jnp.allclose(loss5m, ref5m, rtol=1e-5, atol=1e-5), (loss5m, ref5m)

    print("KERNEL_OK")
</pallas_src>

<mosaic_0001>
module attributes {stable_mosaic.version = 11 : i64} {
  func.func @_focal_sum_kernel(%arg0: i32, %arg1: i32, %arg2: memref<16x32xf32, #tpu.memory_space<vmem>>, %arg3: memref<16x1xi32, #tpu.memory_space<vmem>>, %arg4: memref<1x128xf32, #tpu.memory_space<vmem>>, %arg5: memref<16x1xf32, #tpu.memory_space<vmem>>) attributes {dimension_semantics = [#tpu.dimension_semantics<parallel>, #tpu.dimension_semantics<arbitrary>], iteration_bounds = array<i64: 1, 1>, scalar_prefetch = 0 : i64, scratch_operands = 1 : i64, tpu.core_type = #tpu.core_type<tc>, window_params = [{transform_indices = @transform_0, window_bounds = array<i64: 16, 32>}, {transform_indices = @transform_1, window_bounds = array<i64: 16, 1>}, {transform_indices = @transform_2, window_bounds = array<i64: 1, 128>}]} {
    %c0_i32 = arith.constant 0 : i32
    %0 = arith.cmpi eq, %arg1, %c0_i32 : i32
    %1 = arith.extui %0 : i1 to i32
    %c0_i32_0 = arith.constant 0 : i32
    %2 = arith.cmpi ne, %1, %c0_i32_0 : i32
    scf.if %2 {
      %cst_17 = arith.constant 0.000000e+00 : f32
      %39 = vector.broadcast %cst_17 : f32 to vector<16x1xf32>
      %c0_18 = arith.constant 0 : index
      %c0_19 = arith.constant 0 : index
      %40 = vector.load %arg5[%c0_18, %c0_19] : memref<16x1xf32, #tpu.memory_space<vmem>>, vector<16x1xf32>
      tpu.vector_store %arg5[%c0_18, %c0_19], %39 {strides = array<i32>} : memref<16x1xf32, #tpu.memory_space<vmem>>, vector<16x1xf32>,
    } else {
    }
    %c0 = arith.constant 0 : index
    %c0_1 = arith.constant 0 : index
    %3 = vector.load %arg2[%c0, %c0_1] : memref<16x32xf32, #tpu.memory_space<vmem>>, vector<16x32xf32>
    %c0_2 = arith.constant 0 : index
    %c0_3 = arith.constant 0 : index
    %4 = vector.load %arg3[%c0_2, %c0_3] : memref<16x1xi32, #tpu.memory_space<vmem>>, vector<16x1xi32>
    %cst = arith.constant dense<0xFF800000> : vector<16xf32>
    %5 = vector.multi_reduction <maximumf>, %3, %cst [1] : vector<16x32xf32> to vector<16xf32>
    %6 = vector.shape_cast %5 : vector<16xf32> to vector<16x1xf32>
    %7 = vector.broadcast %6 : vector<16x1xf32> to vector<16x32xf32>
    %8 = arith.subf %3, %7 : vector<16x32xf32>
    %9 = math.exp %8 : vector<16x32xf32>
    %cst_4 = arith.constant dense<0.000000e+00> : vector<16xf32>
    %10 = vector.multi_reduction <add>, %9, %cst_4 [1] : vector<16x32xf32> to vector<16xf32>
    %11 = vector.shape_cast %10 : vector<16xf32> to vector<16x1xf32>
    %12 = tpu.iota {dimensions = array<i32: 1>} : vector<16x32xi32>
    %13 = vector.broadcast %4 : vector<16x1xi32> to vector<16x32xi32>
    %14 = arith.cmpi eq, %12, %13 : vector<16x32xi32>
    %cst_5 = arith.constant 0.000000e+00 : f32
    %15 = vector.broadcast %cst_5 : f32 to vector<16x32xf32>
    %16 = arith.select %14, %3, %15 : vector<16x32xi1>, vector<16x32xf32>
    %cst_6 = arith.constant dense<0.000000e+00> : vector<16xf32>
    %17 = vector.multi_reduction <add>, %16, %cst_6 [1] : vector<16x32xf32> to vector<16xf32>
    %18 = vector.shape_cast %17 : vector<16xf32> to vector<16x1xf32>
    %19 = math.log %11 : vector<16x1xf32>
    %20 = arith.addf %6, %19 : vector<16x1xf32>
    %21 = arith.subf %20, %18 : vector<16x1xf32>
    %cst_7 = arith.constant 0.000000e+00 : f32
    %22 = vector.broadcast %cst_7 : f32 to vector<16x1xf32>
    %23 = arith.maximumf %21, %22 : vector<16x1xf32>
    %cst_8 = arith.constant 0.000000e+00 : f32
    %24 = vector.broadcast %cst_8 : f32 to vector<16x1xf32>
    %25 = arith.subf %24, %23 : vector<16x1xf32>
    %26 = math.exp %25 : vector<16x1xf32>
    %cst_9 = arith.constant 1.000000e+00 : f32
    %27 = vector.broadcast %cst_9 : f32 to vector<16x1xf32>
    %28 = arith.subf %27, %26 : vector<16x1xf32>
    %29 = arith.mulf %28, %28 : vector<16x1xf32>
    %cst_10 = arith.constant 1.000000e+00 : f32
    %30 = vector.broadcast %cst_10 : f32 to vector<16x1xf32>
    %31 = arith.mulf %30, %29 : vector<16x1xf32>
    %32 = arith.mulf %31, %23 : vector<16x1xf32>
    %c0_11 = arith.constant 0 : index
    %c0_12 = arith.constant 0 : index
    %33 = vector.load %arg5[%c0_11, %c0_12] : memref<16x1xf32, #tpu.memory_space<vmem>>, vector<16x1xf32>
    %34 = arith.addf %33, %32 : vector<16x1xf32>
    %c0_13 = arith.constant 0 : index
    %c0_14 = arith.constant 0 : index
    %35 = vector.load %arg5[%c0_13, %c0_14] : memref<16x1xf32, #tpu.memory_space<vmem>>, vector<16x1xf32>
    tpu.vector_store %arg5[%c0_13, %c0_14], %34 {strides = array<i32>} : memref<16x1xf32, #tpu.memory_space<vmem>>, vector<16x1xf32>,
    %c0_i32_15 = arith.constant 0 : i32
    %36 = arith.cmpi eq, %arg1, %c0_i32_15 : i32
    %37 = arith.extui %36 : i1 to i32
    %c0_i32_16 = arith.constant 0 : i32
    %38 = arith.cmpi ne, %37, %c0_i32_16 : i32
    scf.if %38 {
      %c0_17 = arith.constant 0 : index
      %c0_18 = arith.constant 0 : index
      %39 = vector.load %arg5[%c0_17, %c0_18] : memref<16x1xf32, #tpu.memory_space<vmem>>, vector<16x1xf32>
      %cst_19 = arith.constant dense<0.000000e+00> : vector<1xf32>
      %40 = vector.multi_reduction <add>, %39, %cst_19 [0] : vector<16x1xf32> to vector<1xf32>
      %41 = vector.shape_cast %40 : vector<1xf32> to vector<1x1xf32>
      %42 = vector.shape_cast %41 : vector<1x1xf32> to vector<1x1xf32>
      %43 = vector.broadcast %42 : vector<1x1xf32> to vector<1x128xf32>
      %c0_20 = arith.constant 0 : index
      %c0_21 = arith.constant 0 : index
      %44 = vector.load %arg4[%c0_20, %c0_21] : memref<1x128xf32, #tpu.memory_space<vmem>>, vector<1x128xf32>
      tpu.vector_store %arg4[%c0_20, %c0_21], %43 {strides = array<i32>} : memref<1x128xf32, #tpu.memory_space<vmem>>, vector<1x128xf32>,
    } else {
    }
    return
  }
  func.func @transform_0(%arg0: i32, %arg1: i32) -> (i32, i32) {
    %c1_i32 = arith.constant 1 : i32
    %0 = arith.muli %arg0, %c1_i32 : i32
    %1 = arith.addi %0, %arg1 : i32
    %c0_i32 = arith.constant 0 : i32
    %c0_i32_0 = arith.constant 0 : i32
    return %1, %c0_i32 : i32, i32
  }
  func.func @transform_1(%arg0: i32, %arg1: i32) -> (i32, i32) {
    %c1_i32 = arith.constant 1 : i32
    %0 = arith.muli %arg0, %c1_i32 : i32
    %1 = arith.addi %0, %arg1 : i32
    %c0_i32 = arith.constant 0 : i32
    %c0_i32_0 = arith.constant 0 : i32
    return %1, %c0_i32 : i32, i32
  }
  func.func @transform_2(%arg0: i32, %arg1: i32) -> (i32, i32) {
    %c0_i32 = arith.constant 0 : i32
    %c0_i32_0 = arith.constant 0 : i32
    return %c0_i32, %arg0 : i32, i32
  }
}

</mosaic_0001>

<bundles_post_ra>
// kernel: tpu_custom_call.1
= control target key start
LH: loop header
LB: loop body
LE: loop exit
PB: predicated region body
PF: predicated region fallthrough
CT: control target
= control target key end

     0   :  { %vm67_vm0 = vcmask 261120   ;;  %v218_v4 = vmov 0   ;;  %s263_s0 = inlined_call_operand.vmem [shape: f32[16,32], index: 0, kind: input, shape index: {}]   ;;  %s264_s1 = inlined_call_operand.vmem [shape: s32[16,1], index: 1, kind: input, shape index: {}]   ;;  %s265_s2 = inlined_call_operand.hbm [shape: f32[1,128], index: 2, kind: output, shape index: {}]  }
   0x1   :  { %v63_v0 = vld [vmem:[%s263_s0] sm:$0xff]  ;;  %v64_v1 = vld [vmem:[%s263_s0 + $0x8] sm:$0xff]  ;;  %182 = vset.pattern.permute.xlu1 %v218_v4  ;;  %183 = vset.pattern.permute.xlu0 %v218_v4 }
   0x2   :  { %v65_v2 = vld [vmem:[%s264_s1] sm:$0xff]  ;;  %v68_v3 = vsel %vm67_vm0, %v63_v0, -inf }
   0x3   :  { %7 = vsyncpa [#allocation4], 0  ;;  %69 = vmax.xlane.f32.xlu0 %v68_v3  ;;  %89 = vperm.xlu1 %182, %v65_v2   ;;  %v71_v5 = vsel %vm67_vm0, %v64_v1, -inf  ;;  %v66_v6 = vld [vmem:[%s264_s1 + $0x8] sm:$0xff]  ;;  %v86_v13 = vlaneseq  ;;  %vm60_vm3 = vcmask 7168   ;;  %v219_v25 = vmov 0.0  }
   0x4   :  { %61 = vst.msk [vmem:[#allocation2] sm:$0xff] %vm60_vm3, %v219_v25  ;;  %62 = vst.msk [vmem:[#allocation2 + $0x8] sm:$0xff] %vm60_vm3, %v219_v25  ;;  %s220_s0 = smov [#allocation3]  }
   0x5   :  { %v87_v15 = vand.u32 127, %v86_v13  ;;  %s159_s1 = sshll.u32 %s220_s0, 4  ;;  %s160_s1 = int_to_ptr.vmem [resolvable:$true] %s159_s1 }
   0x6   :  { %s196_s17 = scalar_lea.vmem %s160_s1, 16  ;;  %s200_s18 = scalar_lea.vmem %s160_s1, 32 }
   0x7   :  { %72 = vmax.xlane.f32.xlu0 %v71_v5  ;;  %92 = vperm.xlu1 %182, %v66_v6   ;;  %p197_p0 = scmp.ne.s32.totalorder %s160_s1, %s196_s17  ;;  %p201_p1 = scmp.lt.s32.totalorder %s160_s1, %s160_s1 }
   0x8   :  { %p202_p2 = scmp.lt.s32.totalorder %s200_s18, %s196_s17 }
   0xa   :  { %p203_p3 = por %p202_p2, %p201_p1 }
   0xb   :  { %v126_v48 = vld [vmem:[#allocation2] sm:$0xff]  ;;  %v127_v53 = vld [vmem:[#allocation2 + $0x8] sm:$0xff] }
   0xc   :  { %p204_p4 = pnand %p203_p3, %p197_p0 }
  0x7e   :  { %v90_v14 = vpop.permute.xlu1 %89 }
  0x7f   :  { %vm94_vm1 = vcmp.eq.s32.totalorder %v87_v15, %v90_v14 }
  0x80   :  { %v96_v18 = vsel %vm94_vm1, %v63_v0, 0.0 }
  0x81   :  { %v98_v20 = vsel %vm67_vm0, %v96_v18, 0.0 }
  0x82   :  { %v93_v16 = vpop.permute.xlu1 %92 }
  0x83   :  { %vm95_vm2 = vcmp.eq.s32.totalorder %v87_v15, %v93_v16 }
  0x84   :  { %v97_v22 = vsel %vm95_vm2, %v64_v1, 0.0 }
  0x85   :  { %v101_v24 = vsel %vm67_vm0, %v97_v22, 0.0 }
  0x8c   :  { %v70_v7 = vpop.xlane.xlu0 %69 }
  0x8d   :  { %v74_v8 = vsub.f32 %v63_v0, %v70_v7 }
  0x8f   :  { %v76_v9 = vmul.f32 1.442695, %v74_v8 }
  0x90   :  { %v73_v10 = vpop.xlane.xlu0 %72 }
  0x91   :  { %184 = vpow2.f32 %v76_v9  ;;  %v75_v11 = vsub.f32 %v64_v1, %v73_v10 }
  0x93   :  { %v78_v12 = vmul.f32 1.442695, %v75_v11 }
  0x95   :  { %186 = vpow2.f32 %v78_v12 }
  0x9e   :  { %v185_v17 = vpop.eup %184 }
  0x9f   :  { %v80_v19 = vsel %vm67_vm0, %v185_v17, 0.0 }
  0xa0   :  { %81 = vadd.xlane.f32.xlu0 %v80_v19 }
  0xa2   :  { %v187_v21 = vpop.eup %186 }
  0xa3   :  { %v83_v23 = vsel %vm67_vm0, %v187_v21, 0.0 }
  0xa4   :  { %84 = vadd.xlane.f32.xlu1 %v83_v23  ;;  %99 = vadd.xlane.f32.xlu0 %v98_v20 }
  0xa8   :  { %102 = vadd.xlane.f32.xlu0 %v101_v24 }
 0x129   :  { %v82_v26 = vpop.xlane.xlu0 %81 }
 0x12a   :  { %188 = vlog2.f32 %v82_v26 }
 0x12d   :  { %v85_v27 = vpop.xlane.xlu1 %84  ;;  %v100_v30 = vpop.xlane.xlu0 %99 }
 0x12e   :  { %190 = vlog2.f32 %v85_v27 }
 0x131   :  { %v103_v37 = vpop.xlane.xlu0 %102 }
 0x137   :  { %v189_v28 = vpop.eup %188 }
 0x138   :  { %v105_v29 = vmul.f32 0.6931472, %v189_v28 }
 0x13a   :  { %v108_v31 = vadd.f32 %v105_v29, %v70_v7 }
 0x13b   :  { %v191_v32 = vpop.eup %190 }
 0x13c   :  { %v107_v33 = vmul.f32 0.6931472, %v191_v32  ;;  %v110_v34 = vsub.f32 %v108_v31, %v100_v30 }
 0x13e   :  { %v112_v35 = vmax.f32 %v110_v34, 0.0  ;;  %v109_v36 = vadd.f32 %v107_v33, %v73_v10 }
 0x140   :  { %v114_v38 = vsub.f32 0.0, %v112_v35  ;;  %v111_v39 = vsub.f32 %v109_v36, %v103_v37 }
 0x142   :  { %v116_v40 = vmul.f32 1.442695, %v114_v38  ;;  %v113_v41 = vmax.f32 %v111_v39, 0.0 }
 0x144   :  { %192 = vpow2.f32 %v116_v40  ;;  %v115_v42 = vsub.f32 0.0, %v113_v41 }
 0x146   :  { %v118_v43 = vmul.f32 1.442695, %v115_v42 }
 0x148   :  { %194 = vpow2.f32 %v118_v43 }
 0x151   :  { %v193_v44 = vpop.eup %192 }
 0x152   :  { %v120_v45 = vsub.f32 1.0, %v193_v44 }
 0x154   :  { %v122_v46 = vmul.f32 %v120_v45, %v120_v45 }
 0x155   :  { %v195_v47 = vpop.eup %194 }
 0x156   :  { %v124_v49 = vmul.f32 %v122_v46, %v112_v35  ;;  %v121_v50 = vsub.f32 1.0, %v195_v47 }
 0x158   :  { %v128_v51 = vadd.f32 %v126_v48, %v124_v49  ;;  %v123_v52 = vmul.f32 %v121_v50, %v121_v50 }
 0x15a   :  { %131 = vst.msk [vmem:[#allocation2] sm:$0xff] %vm60_vm3, %v128_v51  ;;  %v125_v54 = vmul.f32 %v123_v52, %v113_v41 }
 0x15c   :  { %v129_v55 = vadd.f32 %v127_v53, %v125_v54 }
 0x15e   :  { %132 = vst.msk [vmem:[#allocation2 + $0x8] sm:$0xff] %vm60_vm3, %v129_v55 }
 0x161   :  { %v136_v56 = vld [vmem:[#allocation2] sm:$0xff] }
 0x162   :  { %v138_v58 = vsel %vm60_vm3, %v136_v56, 0.0 }
 0x165   :  { %v137_v57 = vld [vmem:[#allocation2 + $0x8] sm:$0xff] }
 0x166   :  { %v139_v59 = vsel %vm60_vm3, %v137_v57, 0.0 }
 0x167   :  { %v140_v60 = vadd.f32 %v139_v59, %v138_v58 }
 0x169   :  { %v141_v61 = vrot.slane %v140_v60, 4 }
 0x16b   :  { %v142_v62 = vadd.f32 %v141_v61, %v140_v60 }
 0x16d   :  { %v143_v63 = vrot.slane %v142_v62, 2 }
 0x16f   :  { %v144_v0 = vadd.f32 %v143_v63, %v142_v62 }
 0x171   :  { %v145_v1 = vrot.slane %v144_v0, 1 }
 0x173   :  { %v146_v2 = vadd.f32 %v145_v1, %v144_v0 }
 0x175   :  { %149 = vperm.xlu0 %183, %v146_v2  }
 0x1f0   :  { %v150_v3 = vpop.permute.xlu0 %149 }
 0x1f1   :  { %152 = vst [vmem:[#allocation3] sm:$0x1] %v150_v3 }
 0x1f2   :  { %207 = shalt.err (!%p204_p4)
}
 0x1f3   :  { %162 = dma.vmem_to_hbm [thread:$0]  %s160_s1, 16, %s265_s2, [#allocation4]  }
 0x1f4   :  { %216 = dma.done.wait [#allocation4], 16  }
 0x1f5   :  { %217 = vsyncadd [#allocation4], 4294967280 }
 0x1f6   :  { %166 = vsyncpa [#allocation4], 1 }

</bundles_post_ra>
